<compile_context>
chip_gen: v7x
topology: tpu7x:2x2x1
jax: 0.10.0
libtpu: 0.0.40
codegen_flags: <defaults>
</compile_context>

<pallas_src>
import functools

import jax
import jax.numpy as jnp
from jax.experimental import pallas as pl
from jax.experimental.pallas import tpu as pltpu

_LANE = 128       # vreg lane width
_SUBLANE_BF16 = 16  # bf16 sublane packing (min bf16 tile is (16, 128))


def _round_up(n, m):
    return ((n + m - 1) // m) * m


def fused_lstm_fc_kernel(x_ref, *refs, num_layers, hp):
    """Fused num_layers x (LSTM cell step, zero state) + final Linear.

    One grid step processes a (TB, D0) batch tile.  Argument layout (all VMEM):
      x_ref                        : (TB, D0)      bf16 input features
      refs[2l], refs[2l+1]         : (D_l, 3*Hp) bf16 weights [i|g|o] (each gate 128-padded),
                                     (1, 3*Hp)   f32  fused bias (zero in pad lanes)
      refs[2L], refs[2L+1]         : (Hp, Op)    bf16 fc weight,  (1, Op) f32 fc bias
      refs[-1]                     : (TB, Op)    bf16 output (lane-dense, padded)
    """
    out_ref = refs[-1]

    h = x_ref[...]                                        # (TB, D_l) bf16
    for l in range(num_layers):
        w = refs[2 * l][...]                              # (D_l, 3*Hp) bf16
        b = refs[2 * l + 1][...]                          # (1, 3*Hp)  f32
        gates = jnp.dot(h, w, preferred_element_type=jnp.float32) + b
        # Whole-vreg aligned gate slices (each Hp = 128 lanes wide).
        i_g = jax.nn.sigmoid(gates[:, 0 * hp:1 * hp])
        g_g = jnp.tanh(gates[:, 1 * hp:2 * hp])
        o_g = jax.nn.sigmoid(gates[:, 2 * hp:3 * hp])
        # f32 epilogue (portable to v5e's f32-only VPU/EUP), single bf16 cast of h.
        h = (o_g * jnp.tanh(i_g * g_g)).astype(jnp.bfloat16)   # (TB, Hp), pad cols == 0

    w_fc = refs[2 * num_layers][...]                      # (Hp, Op) bf16
    b_fc = refs[2 * num_layers + 1][...]                  # (1, Op)  f32
    out_ref[...] = (jnp.dot(h, w_fc, preferred_element_type=jnp.float32)
                    + b_fc).astype(out_ref.dtype)         # single lane-dense bf16 store


def init_params(key, input_dim, hidden_dim, output_dim, num_layers,
                matmul_dtype=jnp.bfloat16):
    """Parameters mirroring PyTorch init, pre-packed for the fused kernel.

    nn.LSTM layer l: weight_ih_l{l} (4H, in_l), bias_ih_l{l} (4H,), bias_hh_l{l} (4H,)
    (weight_hh is unused at seq_len==1 with zero initial state.)
    Gate re-pack: PyTorch order [i, f, g, o] -> used subset [i | g | o], each gate
    zero-padded to 128 lanes (exact: padded gate -> h_pad == 0).
    Layers l>0 take the 128-padded h, with pad-rows of the weight set to zero.
    nn.Linear: weight (O, H), bias (O,) -> zero-padded to (Hp, 128-lane-dense slab).
    """
    H = hidden_dim
    Hp = _round_up(H, _LANE)
    stdv = 1.0 / float(hidden_dim) ** 0.5

    layers = []
    for l in range(num_layers):
        in_torch = input_dim if l == 0 else hidden_dim     # PyTorch layer input width
        in_l = input_dim if l == 0 else Hp                 # kernel layer input width
        key, k1, k2, k3 = jax.random.split(key, 4)
        w_ih = jax.random.uniform(k1, (4 * H, in_torch),
                                  minval=-stdv, maxval=stdv, dtype=jnp.float32)
        b_ih = jax.random.uniform(k2, (4 * H,),
                                  minval=-stdv, maxval=stdv, dtype=jnp.float32)
        b_hh = jax.random.uniform(k3, (4 * H,),
                                  minval=-stdv, maxval=stdv, dtype=jnp.float32)
        b = b_ih + b_hh
        # Used gates in PyTorch layout: i = [0:H], g = [2H:3H], o = [3H:4H].
        gate_ws = (w_ih[0:H], w_ih[2 * H:3 * H], w_ih[3 * H:4 * H])   # each (H, in_torch)
        gate_bs = (b[0:H], b[2 * H:3 * H], b[3 * H:4 * H])            # each (H,)

        w_packed = jnp.zeros((in_l, 3 * Hp), matmul_dtype)
        b_packed = jnp.zeros((1, 3 * Hp), jnp.float32)
        for gi in range(3):
            w_packed = w_packed.at[:in_torch, gi * Hp:gi * Hp + H].set(
                gate_ws[gi].T.astype(matmul_dtype))
            b_packed = b_packed.at[:, gi * Hp:gi * Hp + H].set(
                gate_bs[gi].reshape(1, H))
        layers.append((w_packed, b_packed))

    key, k1, k2 = jax.random.split(key, 3)
    w_fc = jax.random.uniform(k1, (output_dim, H),
                              minval=-stdv, maxval=stdv, dtype=jnp.float32)
    b_fc = jax.random.uniform(k2, (output_dim,),
                              minval=-stdv, maxval=stdv, dtype=jnp.float32)
    o_pad = _round_up(output_dim, _LANE)
    w_fc_p = jnp.zeros((Hp, o_pad), matmul_dtype).at[:H, :output_dim].set(
        w_fc.T.astype(matmul_dtype))
    b_fc_p = jnp.zeros((1, o_pad), jnp.float32).at[:, :output_dim].set(b_fc)
    return {"layers": layers, "fc": (w_fc_p, b_fc_p)}


@functools.partial(jax.jit, static_argnames=("output_dim", "block_batch"))
def lstm_model_forward(x, params, *, output_dim, block_batch=16):
    """Equivalent of LSTMModel.forward(x) for x of shape (batch, input_dim)."""
    batch, input_dim = x.shape
    num_layers = len(params["layers"])
    hp = params["layers"][0][0].shape[1] // 3              # 128-padded hidden width
    w_fc, b_fc = params["fc"]
    o_pad = w_fc.shape[1]

    # Pad batch to the bf16 tile / grid-tile multiple and pre-cast to bf16
    # (removes the layer-0 pack from the kernel critical path, halves input DMA).
    tb = block_batch
    bp = _round_up(max(batch, _SUBLANE_BF16), tb)
    x_p = jnp.zeros((bp, input_dim), jnp.bfloat16).at[:batch].set(
        x.astype(jnp.bfloat16))

    flat_inputs = [x_p]
    in_specs = [pl.BlockSpec((tb, input_dim), lambda i: (i, 0))]
    for w, b in params["layers"]:
        flat_inputs += [w, b]
        in_specs += [pl.BlockSpec(w.shape, lambda i: (0, 0)),
                     pl.BlockSpec(b.shape, lambda i: (0, 0))]
    flat_inputs += [w_fc, b_fc]
    in_specs += [pl.BlockSpec(w_fc.shape, lambda i: (0, 0)),
                 pl.BlockSpec(b_fc.shape, lambda i: (0, 0))]

    kernel = functools.partial(fused_lstm_fc_kernel,
                               num_layers=num_layers, hp=hp)
    out = pl.pallas_call(
        kernel,
        out_shape=jax.ShapeDtypeStruct((bp, o_pad), jnp.bfloat16),
        grid=(bp // tb,),
        in_specs=in_specs,
        out_specs=pl.BlockSpec((tb, o_pad), lambda i: (i, 0)),
        compiler_params=pltpu.CompilerParams(
            # Batch axis is embarrassingly parallel -> megacore-shardable on v7x.
            dimension_semantics=("parallel",),
            # Generous for TB=16; re-budget against v7x's 64 MiB physical VMEM
            # before raising block_batch into the thousands.
            vmem_limit_bytes=32 * 1024 * 1024,
        ),
    )(*flat_inputs)
    return out[:batch, :output_dim].astype(jnp.float32)


def _reference_forward(x, params, output_dim):
    """Pure-JAX reference with the same dtype flow (bf16 matmul/h, f32 epilogue)."""
    hp = params["layers"][0][0].shape[1] // 3
    h = x.astype(jnp.bfloat16)
    for w, b in params["layers"]:
        gates = jnp.dot(h, w, preferred_element_type=jnp.float32) + b
        i_g = jax.nn.sigmoid(gates[:, 0 * hp:1 * hp])
        g_g = jnp.tanh(gates[:, 1 * hp:2 * hp])
        o_g = jax.nn.sigmoid(gates[:, 2 * hp:3 * hp])
        h = (o_g * jnp.tanh(i_g * g_g)).astype(jnp.bfloat16)
    w_fc, b_fc = params["fc"]
    out = jnp.dot(h, w_fc, preferred_element_type=jnp.float32) + b_fc
    return out[:, :output_dim]


if __name__ == "__main__":
    batch, input_dim, hidden_dim, output_dim, num_layers = 4, 16, 32, 4, 2

    key = jax.random.PRNGKey(0)
    key_x, key_p = jax.random.split(key)
    x = jax.random.normal(key_x, (batch, input_dim), dtype=jnp.float32)
    params = init_params(key_p, input_dim, hidden_dim, output_dim, num_layers)

    out = lstm_model_forward(x, params, output_dim=output_dim)
    jax.block_until_ready(out)
    assert out.shape == (batch, output_dim), out.shape

    ref = _reference_forward(x, params, output_dim)
    assert jnp.allclose(out, ref, atol=2e-2, rtol=2e-2), (out, ref)

    print("KERNEL_OK")
</pallas_src>

<mosaic_0001>
module attributes {stable_mosaic.version = 11 : i64} {
  func.func @fused_lstm_fc_kernel(%arg0: i32, %arg1: memref<16x16xbf16, #tpu.memory_space<vmem>>, %arg2: memref<16x384xbf16, #tpu.memory_space<vmem>>, %arg3: memref<1x384xf32, #tpu.memory_space<vmem>>, %arg4: memref<128x384xbf16, #tpu.memory_space<vmem>>, %arg5: memref<1x384xf32, #tpu.memory_space<vmem>>, %arg6: memref<128x128xbf16, #tpu.memory_space<vmem>>, %arg7: memref<1x128xf32, #tpu.memory_space<vmem>>, %arg8: memref<16x128xbf16, #tpu.memory_space<vmem>>) attributes {dimension_semantics = [#tpu.dimension_semantics<parallel>], iteration_bounds = array<i64: 1>, scalar_prefetch = 0 : i64, scratch_operands = 0 : i64, tpu.core_type = #tpu.core_type<tc>, window_params = [{transform_indices = @transform_0, window_bounds = array<i64: 16, 16>}, {pipeline_mode = #tpu.pipeline_mode<synchronous>, transform_indices = @transform_1, window_bounds = array<i64: 16, 384>}, {pipeline_mode = #tpu.pipeline_mode<synchronous>, transform_indices = @transform_2, window_bounds = array<i64: 1, 384>}, {pipeline_mode = #tpu.pipeline_mode<synchronous>, transform_indices = @transform_3, window_bounds = array<i64: 128, 384>}, {pipeline_mode = #tpu.pipeline_mode<synchronous>, transform_indices = @transform_4, window_bounds = array<i64: 1, 384>}, {pipeline_mode = #tpu.pipeline_mode<synchronous>, transform_indices = @transform_5, window_bounds = array<i64: 128, 128>}, {pipeline_mode = #tpu.pipeline_mode<synchronous>, transform_indices = @transform_6, window_bounds = array<i64: 1, 128>}, {transform_indices = @transform_7, window_bounds = array<i64: 16, 128>}]} {
    %c0 = arith.constant 0 : index
    %c0_0 = arith.constant 0 : index
    %0 = vector.load %arg1[%c0, %c0_0] : memref<16x16xbf16, #tpu.memory_space<vmem>>, vector<16x16xbf16>
    %c0_1 = arith.constant 0 : index
    %c0_2 = arith.constant 0 : index
    %1 = vector.load %arg2[%c0_1, %c0_2] : memref<16x384xbf16, #tpu.memory_space<vmem>>, vector<16x384xbf16>
    %c0_3 = arith.constant 0 : index
    %c0_4 = arith.constant 0 : index
    %2 = vector.load %arg3[%c0_3, %c0_4] : memref<1x384xf32, #tpu.memory_space<vmem>>, vector<1x384xf32>
    %cst = arith.constant dense<0.000000e+00> : vector<16x384xf32>
    %3 = tpu.matmul %0, %1, %cst {dimension_numbers = #tpu.dot_dimension_numbers<[1], [0], [0], [1], [0, 0, 1, 1], [], []>} : vector<16x16xbf16>, vector<16x384xbf16>, vector<16x384xf32> -> vector<16x384xf32>
    %4 = vector.broadcast %2 : vector<1x384xf32> to vector<16x384xf32>
    %5 = arith.addf %3, %4 : vector<16x384xf32>
    %6 = vector.extract_strided_slice %5 {offsets = [0, 0], sizes = [16, 128], strides = [1, 1]} : vector<16x384xf32> to vector<16x128xf32>
    %7 = arith.negf %6 : vector<16x128xf32>
    %8 = math.exp %7 : vector<16x128xf32>
    %cst_5 = arith.constant 1.000000e+00 : f32
    %9 = vector.broadcast %cst_5 : f32 to vector<16x128xf32>
    %10 = arith.addf %9, %8 : vector<16x128xf32>
    %11 = arith.divf %9, %10 : vector<16x128xf32>
    %12 = vector.extract_strided_slice %5 {offsets = [0, 128], sizes = [16, 128], strides = [1, 1]} : vector<16x384xf32> to vector<16x128xf32>
    %13 = math.tanh %12 : vector<16x128xf32>
    %14 = vector.extract_strided_slice %5 {offsets = [0, 256], sizes = [16, 128], strides = [1, 1]} : vector<16x384xf32> to vector<16x128xf32>
    %15 = arith.negf %14 : vector<16x128xf32>
    %16 = math.exp %15 : vector<16x128xf32>
    %cst_6 = arith.constant 1.000000e+00 : f32
    %17 = vector.broadcast %cst_6 : f32 to vector<16x128xf32>
    %18 = arith.addf %17, %16 : vector<16x128xf32>
    %19 = arith.divf %17, %18 : vector<16x128xf32>
    %20 = arith.mulf %11, %13 : vector<16x128xf32>
    %21 = math.tanh %20 : vector<16x128xf32>
    %22 = arith.mulf %19, %21 : vector<16x128xf32>
    %23 = arith.truncf %22 : vector<16x128xf32> to vector<16x128xbf16>
    %c0_7 = arith.constant 0 : index
    %c0_8 = arith.constant 0 : index
    %24 = vector.load %arg4[%c0_7, %c0_8] : memref<128x384xbf16, #tpu.memory_space<vmem>>, vector<128x384xbf16>
    %c0_9 = arith.constant 0 : index
    %c0_10 = arith.constant 0 : index
    %25 = vector.load %arg5[%c0_9, %c0_10] : memref<1x384xf32, #tpu.memory_space<vmem>>, vector<1x384xf32>
    %cst_11 = arith.constant dense<0.000000e+00> : vector<16x384xf32>
    %26 = tpu.matmul %23, %24, %cst_11 {dimension_numbers = #tpu.dot_dimension_numbers<[1], [0], [0], [1], [0, 0, 1, 1], [], []>} : vector<16x128xbf16>, vector<128x384xbf16>, vector<16x384xf32> -> vector<16x384xf32>
    %27 = vector.broadcast %25 : vector<1x384xf32> to vector<16x384xf32>
    %28 = arith.addf %26, %27 : vector<16x384xf32>
    %29 = vector.extract_strided_slice %28 {offsets = [0, 0], sizes = [16, 128], strides = [1, 1]} : vector<16x384xf32> to vector<16x128xf32>
    %30 = arith.negf %29 : vector<16x128xf32>
    %31 = math.exp %30 : vector<16x128xf32>
    %cst_12 = arith.constant 1.000000e+00 : f32
    %32 = vector.broadcast %cst_12 : f32 to vector<16x128xf32>
    %33 = arith.addf %32, %31 : vector<16x128xf32>
    %34 = arith.divf %32, %33 : vector<16x128xf32>
    %35 = vector.extract_strided_slice %28 {offsets = [0, 128], sizes = [16, 128], strides = [1, 1]} : vector<16x384xf32> to vector<16x128xf32>
    %36 = math.tanh %35 : vector<16x128xf32>
    %37 = vector.extract_strided_slice %28 {offsets = [0, 256], sizes = [16, 128], strides = [1, 1]} : vector<16x384xf32> to vector<16x128xf32>
    %38 = arith.negf %37 : vector<16x128xf32>
    %39 = math.exp %38 : vector<16x128xf32>
    %cst_13 = arith.constant 1.000000e+00 : f32
    %40 = vector.broadcast %cst_13 : f32 to vector<16x128xf32>
    %41 = arith.addf %40, %39 : vector<16x128xf32>
    %42 = arith.divf %40, %41 : vector<16x128xf32>
    %43 = arith.mulf %34, %36 : vector<16x128xf32>
    %44 = math.tanh %43 : vector<16x128xf32>
    %45 = arith.mulf %42, %44 : vector<16x128xf32>
    %46 = arith.truncf %45 : vector<16x128xf32> to vector<16x128xbf16>
    %c0_14 = arith.constant 0 : index
    %c0_15 = arith.constant 0 : index
    %47 = vector.load %arg6[%c0_14, %c0_15] : memref<128x128xbf16, #tpu.memory_space<vmem>>, vector<128x128xbf16>
    %c0_16 = arith.constant 0 : index
    %c0_17 = arith.constant 0 : index
    %48 = vector.load %arg7[%c0_16, %c0_17] : memref<1x128xf32, #tpu.memory_space<vmem>>, vector<1x128xf32>
    %cst_18 = arith.constant dense<0.000000e+00> : vector<16x128xf32>
    %49 = tpu.matmul %46, %47, %cst_18 {dimension_numbers = #tpu.dot_dimension_numbers<[1], [0], [0], [1], [0, 0, 1, 1], [], []>} : vector<16x128xbf16>, vector<128x128xbf16>, vector<16x128xf32> -> vector<16x128xf32>
    %50 = vector.broadcast %48 : vector<1x128xf32> to vector<16x128xf32>
    %51 = arith.addf %49, %50 : vector<16x128xf32>
    %52 = arith.truncf %51 : vector<16x128xf32> to vector<16x128xbf16>
    %c0_19 = arith.constant 0 : index
    %c0_20 = arith.constant 0 : index
    %53 = vector.load %arg8[%c0_19, %c0_20] : memref<16x128xbf16, #tpu.memory_space<vmem>>, vector<16x128xbf16>
    tpu.vector_store %arg8[%c0_19, %c0_20], %52 {strides = array<i32>} : memref<16x128xbf16, #tpu.memory_space<vmem>>, vector<16x128xbf16>,
    return
  }
  func.func @transform_0(%arg0: i32) -> (i32, i32) {
    %c0_i32 = arith.constant 0 : i32
    %c0_i32_0 = arith.constant 0 : i32
    return %arg0, %c0_i32 : i32, i32
  }
  func.func @transform_1(%arg0: i32) -> (i32, i32) {
    %c0_i32 = arith.constant 0 : i32
    %c0_i32_0 = arith.constant 0 : i32
    %c0_i32_1 = arith.constant 0 : i32
    return %c0_i32, %c0_i32_0 : i32, i32
  }
  func.func @transform_2(%arg0: i32) -> (i32, i32) {
    %c0_i32 = arith.constant 0 : i32
    %c0_i32_0 = arith.constant 0 : i32
    %c0_i32_1 = arith.constant 0 : i32
    return %c0_i32, %c0_i32_0 : i32, i32
  }
  func.func @transform_3(%arg0: i32) -> (i32, i32) {
    %c0_i32 = arith.constant 0 : i32
    %c0_i32_0 = arith.constant 0 : i32
    %c0_i32_1 = arith.constant 0 : i32
    return %c0_i32, %c0_i32_0 : i32, i32
  }
  func.func @transform_4(%arg0: i32) -> (i32, i32) {
    %c0_i32 = arith.constant 0 : i32
    %c0_i32_0 = arith.constant 0 : i32
    %c0_i32_1 = arith.constant 0 : i32
    return %c0_i32, %c0_i32_0 : i32, i32
  }
  func.func @transform_5(%arg0: i32) -> (i32, i32) {
    %c0_i32 = arith.constant 0 : i32
    %c0_i32_0 = arith.constant 0 : i32
    %c0_i32_1 = arith.constant 0 : i32
    return %c0_i32, %c0_i32_0 : i32, i32
  }
  func.func @transform_6(%arg0: i32) -> (i32, i32) {
    %c0_i32 = arith.constant 0 : i32
    %c0_i32_0 = arith.constant 0 : i32
    %c0_i32_1 = arith.constant 0 : i32
    return %c0_i32, %c0_i32_0 : i32, i32
  }
  func.func @transform_7(%arg0: i32) -> (i32, i32) {
    %c0_i32 = arith.constant 0 : i32
    %c0_i32_0 = arith.constant 0 : i32
    return %arg0, %c0_i32 : i32, i32
  }
}

</mosaic_0001>

<bundles_post_ra>
// kernel: lstm_model_forward.1
= control target key start
LH: loop header
LB: loop body
LE: loop exit
PB: predicated region body
PF: predicated region fallthrough
CT: control target
= control target key end

     0   :  { %12 = vsyncpa [#allocation3], 0  ;;  %s1051_s0 = inlined_call_operand.vmem [shape: bf16[16,16], index: 0, kind: input, shape index: {}]   ;;  %s1052_s1 = inlined_call_operand.vmem [shape: bf16[16,384], index: 1, kind: input, shape index: {}]   ;;  %s1053_s2 = inlined_call_operand.vmem [shape: f32[1,384], index: 2, kind: input, shape index: {}]   ;;  %s1054_s3 = inlined_call_operand.hbm [shape: bf16[128,384], index: 3, kind: input, shape index: {}]   ;;  %s1055_s4 = inlined_call_operand.vmem [shape: f32[1,384], index: 4, kind: input, shape index: {}]   ;;  %s1056_s5 = inlined_call_operand.hbm [shape: bf16[128,128], index: 5, kind: input, shape index: {}]   ;;  %s1057_s6 = inlined_call_operand.vmem [shape: f32[1,128], index: 6, kind: input, shape index: {}]   ;;  %s1058_s7 = inlined_call_operand.vmem [shape: bf16[16,128], index: 7, kind: output, shape index: {}]  }
   0x1   :  { %13 = vsyncpa [#allocation5], 0  ;;  %s914_s24 = smov [#allocation2]   ;;  %s866_s28 = scalar_lea.hbm %s1054_s3, 3072 }
   0x2   :  { %s25_s25 = sshll.u32 %s914_s24, 4  ;;  %p867_p0 = scmp.ne.s32.totalorder %s1054_s3, %s866_s28  ;;  %s26_s25 = int_to_ptr.vmem [resolvable:$true] %s25_s25 }
   0x3   :  { %p870_p1 = scmp.lt.u32.totalorder %s866_s28, %s1054_s3 }
   0x5   :  { %p872_p2 = pnand %p870_p1, %p867_p0 }
   0x7   :  { %875 = shalt.err (!%p872_p2)
}
   0x8   :  { %s876_s10 = scalar_lea.vmem %s26_s25, 3072  ;;  %p881_p4 = scmp.lt.s32.totalorder %s26_s25, %s26_s25 }
   0x9   :  { %p877_p3 = scmp.ne.s32.totalorder %s26_s25, %s876_s10  ;;  %p882_p5 = scmp.lt.s32.totalorder %s876_s10, %s876_s10 }
   0xb   :  { %p883_p6 = por %p882_p5, %p881_p4 }
   0xd   :  { %p884_p7 = pnand %p883_p6, %p877_p3 }
   0xf   :  { %887 = shalt.err (!%p884_p7)
}
  0x10   :  { %s915_s11 = smov 192   ;;  %s916_s12 = smov 12  }
  0x11   :  { %31 = dma.hbm_to_vmem [thread:$0]  %s1054_s3, 3072, %s26_s25, [#allocation3], %s915_s11, %s915_s11, %s916_s12  }
  0x12   :  { %s917_s15 = smov [#allocation4]   ;;  %s888_s19 = scalar_lea.hbm %s1056_s5, 1024 }
  0x13   :  { %s39_s16 = sshll.u32 %s917_s15, 4  ;;  %p889_p8 = scmp.ne.s32.totalorder %s1056_s5, %s888_s19  ;;  %s40_s16 = int_to_ptr.vmem [resolvable:$true] %s39_s16 }
  0x14   :  { %p892_p9 = scmp.lt.u32.totalorder %s888_s19, %s1056_s5 }
  0x16   :  { %p894_p10 = pnand %p892_p9, %p889_p8 }
  0x18   :  { %897 = shalt.err (!%p894_p10)
}
  0x19   :  { %s898_s24 = scalar_lea.vmem %s40_s16, 1024  ;;  %p903_p12 = scmp.lt.s32.totalorder %s40_s16, %s40_s16 }
  0x1a   :  { %p899_p11 = scmp.ne.s32.totalorder %s40_s16, %s898_s24  ;;  %p904_p13 = scmp.lt.s32.totalorder %s898_s24, %s898_s24 }
  0x1c   :  { %p905_p0 = por %p904_p13, %p903_p12 }
  0x1e   :  { %p906_p1 = pnand %p905_p0, %p899_p11 }
  0x20   :  { %909 = shalt.err (!%p906_p1)
}
  0x21   :  { %s918_s3 = smov 64   ;;  %s919_s25 = smov 4  }
  0x22   :  { %45 = dma.hbm_to_vmem [thread:$0]  %s1056_s5, 1024, %s40_s16, [#allocation5], %s918_s3, %s918_s3, %s919_s25  }
  0x23   :  { %910 = dma.done.wait [#allocation3], 3072  }
  0x24   :  { %911 = vsyncadd [#allocation3], 4294964224 }
  0x25   :  { %912 = dma.done.wait [#allocation5], 1024  }
  0x26   :  { %913 = vsyncadd [#allocation5], 4294966272  ;;  %v920_v0 = vmov 0   ;;  %v773_v1 = vld [vmem:[%s1052_s1 + $0x4] ss:$12 sps:$4 sm:$0xff]   ;;  %vm99_vm0 = vcmask 130048   ;;  %v63_v30 = vlaneseq }
  0x27   :  { %135 = vmatprep.mubr.bf16.mxu1 %v920_v0  ;;  %429 = vmatprep.mubr.bf16.mxu0 %v920_v0  ;;  %v775_v2 = vld [vmem:[%s1052_s1] ss:$12 sps:$4 sm:$0xff]   ;;  %v777_v4 = vld [vmem:[%s1052_s1 + $0x8] ss:$12 sps:$4 sm:$0xff]   ;;  %v921_v5 = vmov 0.0   ;;  %vm922_vm1 = vmmov 0  }
  0x28   :  { %103 = vmatprep.subr.bf16.mxu1 %v773_v1  ;;  %v776_v3 = vld [vmem:[%s1051_s0] sm:$0xff]   ;;  %v778_v6 = vld [vmem:[#allocation2 + $0x4] ss:$12 sps:$4 sm:$0xff]   ;;  %v786_v12 = vld [vmem:[#allocation2 + $0x34] ss:$12 sps:$4 sm:$0xff]   ;;  %v1013_v31 = vshrl.u32 %v63_v30, 7 }
  0x29   :  { %104 = vmatpush1.bf16.msra.mxu1 %v775_v2  ;;  %v780_v7 = vld [vmem:[#allocation2] ss:$12 sps:$4 sm:$0xff]   ;;  %v781_v8 = vld [vmem:[#allocation2 + $0x8] ss:$12 sps:$4 sm:$0xff]   ;;  %397 = vmatprep.subr.bf16.mxu0 %v778_v6  ;;  %v784_v10 = vld [vmem:[#allocation2 + $0x18] ss:$12 sps:$4 sm:$0xff]  }
  0x2a   :  { %718 = vmatprep.subr.bf16.mxu1 %v921_v5  ;;  %398 = vmatpush1.bf16.msra.mxu0 %v780_v7  ;;  %v782_v9 = vld [vmem:[#allocation2 + $0x1c] ss:$12 sps:$4 sm:$0xff]   ;;  %v785_v11 = vld [vmem:[#allocation2 + $0x20] ss:$12 sps:$4 sm:$0xff]   ;;  %v789_v14 = vld [vmem:[#allocation2 + $0x38] ss:$12 sps:$4 sm:$0xff]  }
  0x2b   :  { %399 = vmatprep.subr.bf16.mxu0 %v782_v9  ;;  %v788_v13 = vld [vmem:[#allocation2 + $0x30] ss:$12 sps:$4 sm:$0xff]   ;;  %v790_v15 = vld [vmem:[#allocation2 + $0x4c] ss:$12 sps:$4 sm:$0xff]   ;;  %v792_v16 = vld [vmem:[#allocation2 + $0x48] ss:$12 sps:$4 sm:$0xff]  }
  0x2c   :  { %646 = vmatmul.mubr.msk.bf16.vlgmr.msra.gmra.mrb[0].mxu1 %vm99_vm0, %v776_v3  ;;  %v793_v17 = vld [vmem:[#allocation2 + $0x50] ss:$12 sps:$4 sm:$0xff]   ;;  %v796_v19 = vld [vmem:[#allocation2 + $0x60] ss:$12 sps:$4 sm:$0xff]   ;;  %v797_v20 = vld [vmem:[#allocation2 + $0x68] ss:$12 sps:$4 sm:$0xff]  }
  0x2d   :  { %719 = vmatpush3.bf16.msra.mxu1 %v777_v4  ;;  %720 = vmatprep.mubr.msk.bf16.mxu1 %vm922_vm1, %v921_v5  ;;  %v794_v18 = vld [vmem:[#allocation2 + $0x64] ss:$12 sps:$4 sm:$0xff]   ;;  %v798_v21 = vld [vmem:[#allocation2 + $0x7c] ss:$12 sps:$4 sm:$0xff]   ;;  %v801_v23 = vld [vmem:[#allocation2 + $0x80] ss:$12 sps:$4 sm:$0xff]  }
  0x2e   :  { %724 = vmatprep.subr.bf16.mxu1 %v921_v5  ;;  %400 = vmatpush1.bf16.msra.mxu0 %v784_v10  ;;  %v800_v22 = vld [vmem:[#allocation2 + $0x78] ss:$12 sps:$4 sm:$0xff]   ;;  %v802_v24 = vld [vmem:[#allocation2 + $0x94] ss:$12 sps:$4 sm:$0xff]   ;;  %v804_v25 = vld [vmem:[#allocation2 + $0x90] ss:$12 sps:$4 sm:$0xff]  }
  0x2f   :  { %401 = vmatprep.subr.bf16.mxu0 %v786_v12  ;;  %v805_v26 = vld [vmem:[#allocation2 + $0x98] ss:$12 sps:$4 sm:$0xff]   ;;  %v808_v28 = vld [vmem:[#allocation2 + $0xa8] ss:$12 sps:$4 sm:$0xff]   ;;  %v809_v29 = vld [vmem:[#allocation2 + $0xb0] ss:$12 sps:$4 sm:$0xff]  }
  0x30   :  { %v806_v27 = vld [vmem:[#allocation2 + $0xac] ss:$12 sps:$4 sm:$0xff]   ;;  %v65_v32 = vsub.s32 0, %v1013_v31  ;;  %v61_v33 = vld [vmem:[%s1053_s2] sm:$0x7]  ;;  %v73_v38 = vsub.s32 2, %v1013_v31 }
  0x31   :  { %v69_v43 = vsub.s32 1, %v1013_v31 }
  0x32   :  { %402 = vmatpush1.bf16.msra.mxu0 %v788_v13  ;;  %v66_v34 = vrot.slane %v61_v33, %v65_v32  ;;  %v74_v45 = vrot.slane %v61_v33, %v73_v38 }
  0x33   :  { %403 = vmatprep.subr.bf16.mxu0 %v790_v15  ;;  %v70_v47 = vrot.slane %v61_v33, %v69_v43  ;;  %v810_v15 = vld [vmem:[#allocation4] sm:$0xff]  }
  0x34   :  { %721 = vmatmul.mubr.msk.bf16.vlgmr.msra.gmra.mrb[4].mxu1 %vm99_vm0, %v776_v3 }
  0x35   :  { %740 = vmatprep.mubr.msk.bf16.mxu1 %vm922_vm1, %v921_v5  ;;  %725 = vmatpush3.bf16.msra.mxu1 %v781_v8 }
  0x36   :  { %726 = vmatprep.subr.bf16.mxu1 %v921_v5  ;;  %404 = vmatpush1.bf16.msra.mxu0 %v792_v16  ;;  %v811_v16 = vld [vmem:[#allocation4 + $0x8] sm:$0xff]  }
  0x37   :  { %405 = vmatprep.subr.bf16.mxu0 %v794_v18  ;;  %v813_v18 = vld [vmem:[#allocation4 + $0x18] sm:$0xff]  }
  0x39   :  { %727 = vmatpush3.bf16.msra.mxu1 %v785_v11 }
  0x3a   :  { %728 = vmatprep.subr.bf16.mxu1 %v921_v5  ;;  %406 = vmatpush1.bf16.msra.mxu0 %v796_v19  ;;  %v814_v19 = vld [vmem:[#allocation4 + $0x20] sm:$0xff]  }
  0x3b   :  { %407 = vmatprep.subr.bf16.mxu0 %v798_v21  ;;  %v816_v21 = vld [vmem:[#allocation4 + $0x30] sm:$0xff]  }
  0x3d   :  { %729 = vmatpush3.bf16.msra.mxu1 %v789_v14 }
  0x3e   :  { %730 = vmatprep.subr.bf16.mxu1 %v921_v5  ;;  %408 = vmatpush1.bf16.msra.mxu0 %v800_v22  ;;  %v817_v22 = vld [vmem:[#allocation4 + $0x38] sm:$0xff]  }
  0x3f   :  { %409 = vmatprep.subr.bf16.mxu0 %v802_v24 }
  0x41   :  { %731 = vmatpush3.bf16.msra.mxu1 %v793_v17  ;;  %v812_v17 = vld [vmem:[#allocation4 + $0x10] sm:$0xff]  }
  0x42   :  { %732 = vmatprep.subr.bf16.mxu1 %v921_v5  ;;  %410 = vmatpush1.bf16.msra.mxu0 %v804_v25 }
  0x43   :  { %411 = vmatprep.subr.bf16.mxu0 %v806_v27 }
  0x45   :  { %733 = vmatpush3.bf16.msra.mxu1 %v797_v20  ;;  %v815_v20 = vld [vmem:[#allocation4 + $0x28] sm:$0xff]  }
  0x46   :  { %734 = vmatprep.subr.bf16.mxu1 %v921_v5  ;;  %412 = vmatpush1.bf16.msra.mxu0 %v808_v28 }
  0x47   :  { %744 = vmatprep.subr.bf16.mxu0 %v921_v5 }
  0x49   :  { %735 = vmatpush3.bf16.msra.mxu1 %v801_v23  ;;  %v252_v23 = vld [vmem:[%s1055_s4] sm:$0x7] }
  0x4a   :  { %736 = vmatprep.subr.bf16.mxu1 %v921_v5  ;;  %v257_v24 = vrot.slane %v252_v23, %v65_v32  ;;  %v265_v28 = vrot.slane %v252_v23, %v73_v38 }
  0x4d   :  { %737 = vmatpush3.bf16.msra.mxu1 %v805_v26 }
  0x4e   :  { %738 = vmatprep.subr.bf16.mxu1 %v921_v5 }
  0x51   :  { %739 = vmatpush3.bf16.msra.mxu1 %v809_v29 }
  0xff   :  { %v137_v35 = vpop.f32.mrb[0].mxu1 }
 0x100   :  { %v138_v36 = vadd.f32 %v137_v35, %v66_v34  ;;  %v139_v37 = vpop.f32.mrb[1].mxu1 }
 0x101   :  { %v141_v39 = vpop.f32.mrb[2].mxu1  ;;  %v140_v54 = vadd.f32 %v139_v37, %v70_v47 }
 0x102   :  { %v648_v40 = vmul.f32 -1.442695, %v138_v36  ;;  %v142_v41 = vadd.f32 %v141_v39, %v66_v34  ;;  %v143_v42 = vpop.f32.mrb[3].mxu1 }
 0x103   :  { %v144_v57 = vadd.f32 %v143_v42, %v70_v47  ;;  %v261_v42 = vrot.slane %v252_v23, %v69_v43 }
 0x104   :  { %818 = vpow2.f32 %v648_v40  ;;  %v649_v44 = vmul.f32 -1.442695, %v142_v41 }
 0x106   :  { %820 = vpow2.f32 %v649_v44 }
 0x107   :  { %v180_v46 = vpop.f32.mrb[4].mxu1 }
 0x108   :  { %v181_v48 = vadd.f32 %v180_v46, %v74_v45  ;;  %v722_v49 = vpop.f32.mrb[5].mxu1 }
 0x109   :  { %v183_v50 = vpop.f32.mrb[6].mxu1 }
 0x10a   :  { %v650_v51 = vmul.f32 -1.442695, %v181_v48  ;;  %v184_v52 = vadd.f32 %v183_v50, %v74_v45  ;;  %v723_v53 = vpop.f32.mrb[7].mxu1 }
 0x10c   :  { %822 = vpow2.f32 %v650_v51  ;;  %v651_v55 = vmul.f32 -1.442695, %v184_v52 }
 0x10e   :  { %v819_v56 = vpop.eup %818  ;;  %824 = vpow2.f32 %v651_v55 }
 0x10f   :  { %v193_v58 = vadd.f32 1.0, %v819_v56  ;;  %826 = vtanh.f32 %v140_v54 }
 0x110   :  { %v821_v59 = vpop.eup %820 }
 0x111   :  { %828 = vrcp.f32 %v193_v58  ;;  %v194_v60 = vadd.f32 1.0, %v821_v59 }
 0x112   :  { %830 = vtanh.f32 %v144_v57 }
 0x113   :  { %832 = vrcp.f32 %v194_v60 }
 0x116   :  { %v823_v61 = vpop.eup %822 }
 0x117   :  { %v207_v63 = vadd.f32 1.0, %v823_v61 }
 0x118   :  { %v825_v62 = vpop.eup %824 }
 0x119   :  { %v827_v0 = vpop.eup %826  ;;  %v208_v2 = vadd.f32 1.0, %v825_v62  ;;  %834 = vrcp.f32 %v207_v63 }
 0x11b   :  { %v829_v1 = vpop.eup %828 }
 0x11c   :  { %v831_v3 = vpop.eup %830  ;;  %v213_v4 = vmul.f32 %v829_v1, %v827_v0  ;;  %v680_v1 = vld [vmem:[%s1057_s6] ss:$0 sm:$0xff] }
 0x11d   :  { %v833_v6 = vpop.eup %832 }
 0x11e   :  { %836 = vtanh.f32 %v213_v4  ;;  %v214_v7 = vmul.f32 %v833_v6, %v831_v3 }
 0x11f   :  { %838 = vrcp.f32 %v208_v2 }
 0x120   :  { %840 = vtanh.f32 %v214_v7 }
 0x123   :  { %v835_v8 = vpop.eup %834 }
 0x128   :  { %v837_v9 = vpop.eup %836 }
 0x129   :  { %v839_v10 = vpop.eup %838  ;;  %v217_v11 = vmul.f32 %v837_v9, %v835_v8 }
 0x12a   :  { %v841_v12 = vpop.eup %840 }
 0x12b   :  { %v218_v13 = vmul.f32 %v841_v12, %v839_v10 }
 0x12d   :  { %v219_v14 = vpack.c.bf16 %v218_v13, %v217_v11 }
 0x12f   :  { %430 = vmatmul.mubr.bf16.vlgmr.msra.gmra.mrb[0].mxu0 %v219_v14  ;;  %741 = vmatmul.mubr.bf16.vlgmr.msra.gmra.mrb[8].mxu1 %v219_v14 }
 0x130   :  { %760 = vmatprep.mubr.msk.bf16.mxu0 %vm922_vm1, %v921_v5  ;;  %745 = vmatpush3.bf16.msra.mxu0 %v810_v15 }
 0x131   :  { %746 = vmatprep.subr.bf16.mxu0 %v921_v5 }
 0x134   :  { %747 = vmatpush3.bf16.msra.mxu0 %v811_v16 }
 0x135   :  { %748 = vmatprep.subr.bf16.mxu0 %v921_v5 }
 0x138   :  { %749 = vmatpush3.bf16.msra.mxu0 %v812_v17 }
 0x139   :  { %750 = vmatprep.subr.bf16.mxu0 %v921_v5 }
 0x13c   :  { %751 = vmatpush3.bf16.msra.mxu0 %v813_v18 }
 0x13d   :  { %752 = vmatprep.subr.bf16.mxu0 %v921_v5 }
 0x140   :  { %753 = vmatpush3.bf16.msra.mxu0 %v814_v19 }
 0x141   :  { %754 = vmatprep.subr.bf16.mxu0 %v921_v5 }
 0x144   :  { %755 = vmatpush3.bf16.msra.mxu0 %v815_v20 }
 0x145   :  { %756 = vmatprep.subr.bf16.mxu0 %v921_v5 }
 0x148   :  { %757 = vmatpush3.bf16.msra.mxu0 %v816_v21 }
 0x149   :  { %758 = vmatprep.subr.bf16.mxu0 %v921_v5 }
 0x14c   :  { %759 = vmatpush3.bf16.msra.mxu0 %v817_v22 }
 0x202   :  { %v431_v25 = vpop.f32.mrb[0].mxu0  ;;  %v474_v26 = vpop.f32.mrb[8].mxu1 }
 0x203   :  { %v432_v27 = vadd.f32 %v431_v25, %v257_v24  ;;  %v433_v29 = vpop.f32.mrb[1].mxu0  ;;  %v742_v30 = vpop.f32.mrb[9].mxu1  ;;  %v475_v39 = vadd.f32 %v474_v26, %v265_v28 }
 0x204   :  { %v435_v33 = vpop.f32.mrb[2].mxu0  ;;  %v477_v34 = vpop.f32.mrb[10].mxu1  ;;  %v434_v38 = vadd.f32 %v433_v29, %v261_v42 }
 0x205   :  { %v676_v35 = vmul.f32 -1.442695, %v432_v27  ;;  %v436_v5 = vadd.f32 %v435_v33, %v257_v24  ;;  %v437_v36 = vpop.f32.mrb[3].mxu0  ;;  %v743_v37 = vpop.f32.mrb[11].mxu1  ;;  %v478_v41 = vadd.f32 %v477_v34, %v265_v28  ;;  %v678_v32 = vmul.f32 -1.442695, %v475_v39 }
 0x206   :  { %v438_v46 = vadd.f32 %v437_v36, %v261_v42 }
 0x207   :  { %842 = vpow2.f32 %v676_v35  ;;  %v677_v40 = vmul.f32 -1.442695, %v436_v5  ;;  %v679_v44 = vmul.f32 -1.442695, %v478_v41 }
 0x209   :  { %844 = vpow2.f32 %v677_v40 }
 0x20a   :  { %846 = vpow2.f32 %v678_v32 }
 0x20b   :  { %848 = vpow2.f32 %v679_v44 }
 0x20c   :  { %850 = vtanh.f32 %v434_v38 }
 0x211   :  { %v843_v45 = vpop.eup %842 }
 0x212   :  { %v487_v47 = vadd.f32 1.0, %v843_v45 }
 0x213   :  { %v845_v48 = vpop.eup %844 }
 0x214   :  { %852 = vrcp.f32 %v487_v47  ;;  %v488_v49 = vadd.f32 1.0, %v845_v48  ;;  %v847_v50 = vpop.eup %846 }
 0x215   :  { %854 = vtanh.f32 %v438_v46  ;;  %v849_v51 = vpop.eup %848  ;;  %v501_v52 = vadd.f32 1.0, %v847_v50 }
 0x216   :  { %856 = vrcp.f32 %v488_v49  ;;  %v851_v53 = vpop.eup %850  ;;  %v502_v31 = vadd.f32 1.0, %v849_v51 }
 0x217   :  { %858 = vrcp.f32 %v501_v52 }
 0x21e   :  { %v853_v54 = vpop.eup %852 }
 0x21f   :  { %v855_v43 = vpop.eup %854  ;;  %v507_v55 = vmul.f32 %v853_v54, %v851_v53 }
 0x220   :  { %v857_v56 = vpop.eup %856 }
 0x221   :  { %860 = vtanh.f32 %v507_v55  ;;  %v508_v57 = vmul.f32 %v857_v56, %v855_v43  ;;  %v859_v58 = vpop.eup %858 }
 0x222   :  { %862 = vrcp.f32 %v502_v31 }
 0x223   :  { %864 = vtanh.f32 %v508_v57 }
 0x22b   :  { %v861_v59 = vpop.eup %860 }
 0x22c   :  { %v863_v60 = vpop.eup %862  ;;  %v511_v61 = vmul.f32 %v861_v59, %v859_v58 }
 0x22d   :  { %v865_v62 = vpop.eup %864 }
 0x22e   :  { %v512_v63 = vmul.f32 %v865_v62, %v863_v60 }
 0x230   :  { %v513_v0 = vpack.c.bf16 %v512_v63, %v511_v61 }
 0x232   :  { %761 = vmatmul.mubr.bf16.vlgmr.msra.gmra.mrb[4].mxu0 %v513_v0 }
 0x305   :  { %v619_v2 = vpop.f32.mrb[4].mxu0 }
 0x306   :  { %v762_v3 = vpop.f32.mrb[5].mxu0  ;;  %v620_v6 = vadd.f32 %v680_v1, %v619_v2 }
 0x307   :  { %v622_v4 = vpop.f32.mrb[6].mxu0 }
 0x308   :  { %v623_v7 = vadd.f32 %v680_v1, %v622_v4  ;;  %v763_v8 = vpop.f32.mrb[7].mxu0 }
 0x30a   :  { %v696_v9 = vpack.c.bf16 %v623_v7, %v620_v6 }
 0x30c   :  { %697 = vst [vmem:[%s1058_s7] sm:$0xff] %v696_v9  }
 0x30d   :  { %640 = vsyncpa [#allocation3], 1 }
 0x30e   :  { %641 = vsyncpa [#allocation5], 1 }

</bundles_post_ra>
